<compile_context>
chip_gen: v7x
topology: tpu7x:2x2x1
jax: 0.10.0
libtpu: 0.0.40
codegen_flags: <defaults>
</compile_context>

<pallas_src>
import jax
import jax.numpy as jnp
from jax.experimental import pallas as pl
from jax.experimental.pallas import tpu as pltpu


def _round_up(n, m):
    return ((n + m - 1) // m) * m


def tem_kernel(x3_ref, w1_ref, b1_ref, w2_ref, b2_ref, w3_ref, b3_ref, o_ref):
    # x3_ref block: (BB, T, K1p) -- tap-stacked [x[t-1] | x[t] | x[t+1]] built
    # in the wrapper (time padding already applied), lane-padded to K1p.
    # w1_ref: (K1p, Hp) fused 3-tap conv1 weight.
    # w2_ref: (3, Hp, Hp) per-tap conv2 weights.
    # w3_ref: (Hp, Cp), b3_ref: (1, Cp) -- already scaled by nonlinear_factor.
    BB, T, K1p = x3_ref.shape
    Hp = w1_ref.shape[1]
    Cp = w3_ref.shape[1]

    # ---- layer 1: one (BB*T, K1p) @ (K1p, Hp) matmul + relu -----------------
    x3 = x3_ref[...].reshape(BB * T, K1p)
    h1 = jnp.maximum(
        jnp.dot(x3, w1_ref[...], preferred_element_type=jnp.float32)
        + b1_ref[...], 0.0)                                     # (BB*T, Hp)

    # ---- layer 2: +-1 time taps formed in-register, 3 accumulated matmuls ---
    # Rows of h1 are ordered (b, t) with t fastest; shifting by one row gives
    # the t-1 / t+1 taps, and the boundary mask (t==0 / t==T-1) reproduces
    # conv1d padding=1 zeros AND blocks cross-batch leakage.  No VMEM scratch.
    t_idx = jax.lax.broadcasted_iota(jnp.int32, (BB, T, Hp), 1).reshape(BB * T, Hp)
    h1m1 = jnp.where(t_idx == 0, 0.0, jnp.roll(h1, 1, axis=0))      # h1[t-1]
    h1p1 = jnp.where(t_idx == T - 1, 0.0, jnp.roll(h1, -1, axis=0))  # h1[t+1]

    h2 = jnp.dot(h1m1, w2_ref[0], preferred_element_type=jnp.float32)
    h2 = h2 + jnp.dot(h1, w2_ref[1], preferred_element_type=jnp.float32)
    h2 = h2 + jnp.dot(h1p1, w2_ref[2], preferred_element_type=jnp.float32)
    h2 = jnp.maximum(h2 + b2_ref[...], 0.0)                     # (BB*T, Hp)

    # ---- layer 3 (k=1) + sigmoid; nonlinear_factor pre-folded into w3/b3 ----
    y = jnp.dot(h2, w3_ref[...], preferred_element_type=jnp.float32) + b3_ref[...]
    o_ref[...] = jax.nn.sigmoid(y).reshape(BB, T, Cp)           # lane-dense 128


def tem_forward(x, params, nonlinear_factor):
    """x: (B, T, F) float32 (PyTorch TEM input before its internal transpose)."""
    B, T, F = x.shape
    w1, b1, w2, b2, w3, b3 = params          # (3,F,H),(1,H),(3,H,H),(1,H),(H,3),(1,3)
    H = w1.shape[2]

    K1 = 3 * F
    K1p = _round_up(K1, 128)                 # fused layer-1 contraction dim
    Hp = _round_up(H, 128)
    Cp = 128                                 # pad 3 output channels -> lane-dense

    nlf = jnp.float32(nonlinear_factor)

    # Fused conv1 weight: rows ordered tap0|tap1|tap2 (compact 3F, then padded).
    w1f = jnp.pad(w1.reshape(K1, H), ((0, K1p - K1), (0, Hp - H)))
    b1p = jnp.pad(b1, ((0, 0), (0, Hp - H)))
    w2p = jnp.pad(w2, ((0, 0), (0, Hp - H), (0, Hp - H)))       # (3, Hp, Hp)
    b2p = jnp.pad(b2, ((0, 0), (0, Hp - H)))
    w3s = jnp.pad(w3, ((0, Hp - H), (0, Cp - w3.shape[1]))) * nlf
    b3s = jnp.pad(b3, ((0, 0), (0, Cp - b3.shape[1]))) * nlf

    # ---- VMEM-budget-driven batch tiling (instead of hard-coded 2 steps) ----
    # Rough per-step footprint: double-buffered x3 + output blocks, double-
    # buffered weights, plus ~6 activation-sized transients in the body.
    bytes_weights = 4 * 2 * (K1p * Hp + 3 * Hp * Hp + Hp * Cp + 2 * Hp + Cp)
    bytes_per_batch = 4 * T * (2 * K1p + 2 * Cp + 6 * max(K1p, Hp, Cp))
    budget = 32 * 1024 * 1024
    BB = int(max(1, min(B, (budget - bytes_weights) // max(bytes_per_batch, 1))))
    NB = -(-B // BB)                          # cdiv
    Bp = NB * BB

    # Tap-stacked layer-1 input built once in the wrapper (time pad +1 each
    # side, 3 shifted views concatenated along channels, lane pad to K1p).
    xpt = jnp.pad(x, ((0, Bp - B), (1, 1), (0, 0)))             # (Bp, T+2, F)
    x3 = jnp.concatenate([xpt[:, k:k + T, :] for k in range(3)], axis=-1)
    x3 = jnp.pad(x3, ((0, 0), (0, 0), (0, K1p - K1)))           # (Bp, T, K1p)

    out = pl.pallas_call(
        tem_kernel,
        out_shape=jax.ShapeDtypeStruct((Bp, T, Cp), jnp.float32),
        grid_spec=pltpu.PrefetchScalarGridSpec(
            num_scalar_prefetch=0,
            grid=(NB,),
            in_specs=[
                pl.BlockSpec((BB, T, K1p), lambda i: (i, 0, 0)),   # tap-stacked x
                pl.BlockSpec((K1p, Hp), lambda i: (0, 0)),         # conv1 fused W
                pl.BlockSpec((1, Hp), lambda i: (0, 0)),           # conv1 bias
                pl.BlockSpec((3, Hp, Hp), lambda i: (0, 0, 0)),    # conv2 per-tap W
                pl.BlockSpec((1, Hp), lambda i: (0, 0)),           # conv2 bias
                pl.BlockSpec((Hp, Cp), lambda i: (0, 0)),          # conv3 W (scaled)
                pl.BlockSpec((1, Cp), lambda i: (0, 0)),           # conv3 bias (scaled)
            ],
            out_specs=pl.BlockSpec((BB, T, Cp), lambda i: (i, 0, 0)),
        ),
        compiler_params=pltpu.CompilerParams(
            dimension_semantics=("parallel",),
            vmem_limit_bytes=48 * 1024 * 1024,   # safe ceiling on v5e/v6e/v7x
        ),
    )(x3, w1f, b1p, w2p, b2p, w3s, b3s)

    # Lane-dense (Bp, T, 128) -> PyTorch (B, 3, T).
    return jnp.transpose(out[:B, :, :3], (0, 2, 1))


def tem_reference(x, params, nonlinear_factor):
    """Pure-JAX reference of the same computation (for a correctness check)."""
    w1, b1, w2, b2, w3, b3 = params

    def conv3(a, w, b):
        ap = jnp.pad(a, ((0, 0), (1, 1), (0, 0)))
        y = (jnp.einsum("btf,fh->bth", ap[:, :-2], w[0])
             + jnp.einsum("btf,fh->bth", ap[:, 1:-1], w[1])
             + jnp.einsum("btf,fh->bth", ap[:, 2:], w[2]))
        return y + b

    h1 = jax.nn.relu(conv3(x, w1, b1))
    h2 = jax.nn.relu(conv3(h1, w2, b2))
    y = jnp.einsum("bth,hc->btc", h2, w3) + b3
    return jnp.transpose(jax.nn.sigmoid(nonlinear_factor * y), (0, 2, 1))


if __name__ == "__main__":
    # Small shapes consistent with TEM: batch=2, num_videoframes (T)=8,
    # tem_feat_dim=32, tem_hidden_dim=32, output_dim=3, nonlinear_factor=0.1
    B, T, F, H = 2, 8, 32, 32
    NONLINEAR_FACTOR = 0.1

    key = jax.random.PRNGKey(0)
    kx, k1, k2, k3 = jax.random.split(key, 4)

    def xavier_normal(k, shape, fan_in, fan_out):
        std = (2.0 / (fan_in + fan_out)) ** 0.5
        return std * jax.random.normal(k, shape, dtype=jnp.float32)

    # Conv1d weights stored pre-transposed as (K, Cin, Cout); biases as (1, Cout)
    # (matches TEM.reset_params: xavier_normal_ weights, zero biases).
    w1 = xavier_normal(k1, (3, F, H), fan_in=F * 3, fan_out=H * 3)
    b1 = jnp.zeros((1, H), jnp.float32)
    w2 = xavier_normal(k2, (3, H, H), fan_in=H * 3, fan_out=H * 3)
    b2 = jnp.zeros((1, H), jnp.float32)
    w3 = xavier_normal(k3, (H, 3), fan_in=H, fan_out=3)
    b3 = jnp.zeros((1, 3), jnp.float32)
    params = (w1, b1, w2, b2, w3, b3)

    x = jax.random.normal(kx, (B, T, F), dtype=jnp.float32)

    out = tem_forward(x, params, NONLINEAR_FACTOR)
    out = jax.block_until_ready(out)

    ref = tem_reference(x, params, NONLINEAR_FACTOR)
    assert out.shape == (B, 3, T)
    assert jnp.allclose(out, ref, atol=1e-4, rtol=1e-4)

    print("KERNEL_OK")
</pallas_src>

<mosaic_0001>
module attributes {stable_mosaic.version = 11 : i64} {
  func.func @tem_kernel(%arg0: i32, %arg1: memref<2x8x128xf32, #tpu.memory_space<vmem>>, %arg2: memref<128x128xf32, #tpu.memory_space<vmem>>, %arg3: memref<1x128xf32, #tpu.memory_space<vmem>>, %arg4: memref<3x128x128xf32, #tpu.memory_space<vmem>>, %arg5: memref<1x128xf32, #tpu.memory_space<vmem>>, %arg6: memref<128x128xf32, #tpu.memory_space<vmem>>, %arg7: memref<1x128xf32, #tpu.memory_space<vmem>>, %arg8: memref<2x8x128xf32, #tpu.memory_space<vmem>>) attributes {dimension_semantics = [#tpu.dimension_semantics<parallel>], iteration_bounds = array<i64: 1>, scalar_prefetch = 0 : i64, scratch_operands = 0 : i64, tpu.core_type = #tpu.core_type<tc>, window_params = [{transform_indices = @transform_0, window_bounds = array<i64: 2, 8, 128>}, {pipeline_mode = #tpu.pipeline_mode<synchronous>, transform_indices = @transform_1, window_bounds = array<i64: 128, 128>}, {pipeline_mode = #tpu.pipeline_mode<synchronous>, transform_indices = @transform_2, window_bounds = array<i64: 1, 128>}, {pipeline_mode = #tpu.pipeline_mode<synchronous>, transform_indices = @transform_3, window_bounds = array<i64: 3, 128, 128>}, {pipeline_mode = #tpu.pipeline_mode<synchronous>, transform_indices = @transform_4, window_bounds = array<i64: 1, 128>}, {pipeline_mode = #tpu.pipeline_mode<synchronous>, transform_indices = @transform_5, window_bounds = array<i64: 128, 128>}, {pipeline_mode = #tpu.pipeline_mode<synchronous>, transform_indices = @transform_6, window_bounds = array<i64: 1, 128>}, {transform_indices = @transform_7, window_bounds = array<i64: 2, 8, 128>}]} {
    %c0 = arith.constant 0 : index
    %c0_0 = arith.constant 0 : index
    %c0_1 = arith.constant 0 : index
    %0 = vector.load %arg1[%c0, %c0_0, %c0_1] : memref<2x8x128xf32, #tpu.memory_space<vmem>>, vector<2x8x128xf32>
    %1 = vector.shape_cast %0 : vector<2x8x128xf32> to vector<16x128xf32>
    %c0_2 = arith.constant 0 : index
    %c0_3 = arith.constant 0 : index
    %2 = vector.load %arg2[%c0_2, %c0_3] : memref<128x128xf32, #tpu.memory_space<vmem>>, vector<128x128xf32>
    %cst = arith.constant dense<0.000000e+00> : vector<16x128xf32>
    %3 = tpu.matmul %1, %2, %cst {dimension_numbers = #tpu.dot_dimension_numbers<[1], [0], [0], [1], [0, 0, 1, 1], [], []>} : vector<16x128xf32>, vector<128x128xf32>, vector<16x128xf32> -> vector<16x128xf32>
    %c0_4 = arith.constant 0 : index
    %c0_5 = arith.constant 0 : index
    %4 = vector.load %arg3[%c0_4, %c0_5] : memref<1x128xf32, #tpu.memory_space<vmem>>, vector<1x128xf32>
    %5 = vector.broadcast %4 : vector<1x128xf32> to vector<16x128xf32>
    %6 = arith.addf %3, %5 : vector<16x128xf32>
    %cst_6 = arith.constant 0.000000e+00 : f32
    %7 = vector.broadcast %cst_6 : f32 to vector<16x128xf32>
    %8 = arith.maximumf %6, %7 : vector<16x128xf32>
    %9 = tpu.iota {dimensions = array<i32: 1>} : vector<2x8x128xi32>
    %10 = vector.shape_cast %9 : vector<2x8x128xi32> to vector<16x128xi32>
    %c0_i32 = arith.constant 0 : i32
    %11 = vector.broadcast %c0_i32 : i32 to vector<16x128xi32>
    %12 = arith.cmpi eq, %10, %11 : vector<16x128xi32>
    %13 = vector.extract_strided_slice %8 {offsets = [15, 0], sizes = [1, 128], strides = [1, 1]} : vector<16x128xf32> to vector<1x128xf32>
    %14 = vector.extract_strided_slice %8 {offsets = [0, 0], sizes = [15, 128], strides = [1, 1]} : vector<16x128xf32> to vector<15x128xf32>
    %15 = tpu.concatenate %13, %14 in 0 : vector<1x128xf32>, vector<15x128xf32> -> vector<16x128xf32>
    %cst_7 = arith.constant 0.000000e+00 : f32
    %16 = vector.broadcast %cst_7 : f32 to vector<16x128xf32>
    %17 = arith.select %12, %16, %15 : vector<16x128xi1>, vector<16x128xf32>
    %c7_i32 = arith.constant 7 : i32
    %18 = vector.broadcast %c7_i32 : i32 to vector<16x128xi32>
    %19 = arith.cmpi eq, %10, %18 : vector<16x128xi32>
    %20 = vector.extract_strided_slice %8 {offsets = [1, 0], sizes = [15, 128], strides = [1, 1]} : vector<16x128xf32> to vector<15x128xf32>
    %21 = vector.extract_strided_slice %8 {offsets = [0, 0], sizes = [1, 128], strides = [1, 1]} : vector<16x128xf32> to vector<1x128xf32>
    %22 = tpu.concatenate %20, %21 in 0 : vector<15x128xf32>, vector<1x128xf32> -> vector<16x128xf32>
    %cst_8 = arith.constant 0.000000e+00 : f32
    %23 = vector.broadcast %cst_8 : f32 to vector<16x128xf32>
    %24 = arith.select %19, %23, %22 : vector<16x128xi1>, vector<16x128xf32>
    %c0_9 = arith.constant 0 : index
    %c0_10 = arith.constant 0 : index
    %c0_11 = arith.constant 0 : index
    %25 = vector.load %arg4[%c0_9, %c0_10, %c0_11] : memref<3x128x128xf32, #tpu.memory_space<vmem>>, vector<1x128x128xf32>
    %26 = vector.shape_cast %25 : vector<1x128x128xf32> to vector<128x128xf32>
    %cst_12 = arith.constant dense<0.000000e+00> : vector<16x128xf32>
    %27 = tpu.matmul %17, %26, %cst_12 {dimension_numbers = #tpu.dot_dimension_numbers<[1], [0], [0], [1], [0, 0, 1, 1], [], []>} : vector<16x128xf32>, vector<128x128xf32>, vector<16x128xf32> -> vector<16x128xf32>
    %c1 = arith.constant 1 : index
    %c0_13 = arith.constant 0 : index
    %c0_14 = arith.constant 0 : index
    %28 = vector.load %arg4[%c1, %c0_13, %c0_14] : memref<3x128x128xf32, #tpu.memory_space<vmem>>, vector<1x128x128xf32>
    %29 = vector.shape_cast %28 : vector<1x128x128xf32> to vector<128x128xf32>
    %cst_15 = arith.constant dense<0.000000e+00> : vector<16x128xf32>
    %30 = tpu.matmul %8, %29, %cst_15 {dimension_numbers = #tpu.dot_dimension_numbers<[1], [0], [0], [1], [0, 0, 1, 1], [], []>} : vector<16x128xf32>, vector<128x128xf32>, vector<16x128xf32> -> vector<16x128xf32>
    %31 = arith.addf %27, %30 : vector<16x128xf32>
    %c2 = arith.constant 2 : index
    %c0_16 = arith.constant 0 : index
    %c0_17 = arith.constant 0 : index
    %32 = vector.load %arg4[%c2, %c0_16, %c0_17] : memref<3x128x128xf32, #tpu.memory_space<vmem>>, vector<1x128x128xf32>
    %33 = vector.shape_cast %32 : vector<1x128x128xf32> to vector<128x128xf32>
    %cst_18 = arith.constant dense<0.000000e+00> : vector<16x128xf32>
    %34 = tpu.matmul %24, %33, %cst_18 {dimension_numbers = #tpu.dot_dimension_numbers<[1], [0], [0], [1], [0, 0, 1, 1], [], []>} : vector<16x128xf32>, vector<128x128xf32>, vector<16x128xf32> -> vector<16x128xf32>
    %35 = arith.addf %31, %34 : vector<16x128xf32>
    %c0_19 = arith.constant 0 : index
    %c0_20 = arith.constant 0 : index
    %36 = vector.load %arg5[%c0_19, %c0_20] : memref<1x128xf32, #tpu.memory_space<vmem>>, vector<1x128xf32>
    %37 = vector.broadcast %36 : vector<1x128xf32> to vector<16x128xf32>
    %38 = arith.addf %35, %37 : vector<16x128xf32>
    %cst_21 = arith.constant 0.000000e+00 : f32
    %39 = vector.broadcast %cst_21 : f32 to vector<16x128xf32>
    %40 = arith.maximumf %38, %39 : vector<16x128xf32>
    %c0_22 = arith.constant 0 : index
    %c0_23 = arith.constant 0 : index
    %41 = vector.load %arg6[%c0_22, %c0_23] : memref<128x128xf32, #tpu.memory_space<vmem>>, vector<128x128xf32>
    %cst_24 = arith.constant dense<0.000000e+00> : vector<16x128xf32>
    %42 = tpu.matmul %40, %41, %cst_24 {dimension_numbers = #tpu.dot_dimension_numbers<[1], [0], [0], [1], [0, 0, 1, 1], [], []>} : vector<16x128xf32>, vector<128x128xf32>, vector<16x128xf32> -> vector<16x128xf32>
    %c0_25 = arith.constant 0 : index
    %c0_26 = arith.constant 0 : index
    %43 = vector.load %arg7[%c0_25, %c0_26] : memref<1x128xf32, #tpu.memory_space<vmem>>, vector<1x128xf32>
    %44 = vector.broadcast %43 : vector<1x128xf32> to vector<16x128xf32>
    %45 = arith.addf %42, %44 : vector<16x128xf32>
    %46 = arith.negf %45 : vector<16x128xf32>
    %47 = math.exp %46 : vector<16x128xf32>
    %cst_27 = arith.constant 1.000000e+00 : f32
    %48 = vector.broadcast %cst_27 : f32 to vector<16x128xf32>
    %49 = arith.addf %48, %47 : vector<16x128xf32>
    %50 = arith.divf %48, %49 : vector<16x128xf32>
    %51 = vector.shape_cast %50 : vector<16x128xf32> to vector<2x8x128xf32>
    %c0_28 = arith.constant 0 : index
    %c0_29 = arith.constant 0 : index
    %c0_30 = arith.constant 0 : index
    %52 = vector.load %arg8[%c0_28, %c0_29, %c0_30] : memref<2x8x128xf32, #tpu.memory_space<vmem>>, vector<2x8x128xf32>
    tpu.vector_store %arg8[%c0_28, %c0_29, %c0_30], %51 {strides = array<i32>} : memref<2x8x128xf32, #tpu.memory_space<vmem>>, vector<2x8x128xf32>,
    return
  }
  func.func @transform_0(%arg0: i32) -> (i32, i32, i32) {
    %c0_i32 = arith.constant 0 : i32
    %c0_i32_0 = arith.constant 0 : i32
    %c0_i32_1 = arith.constant 0 : i32
    return %arg0, %c0_i32, %c0_i32_0 : i32, i32, i32
  }
  func.func @transform_1(%arg0: i32) -> (i32, i32) {
    %c0_i32 = arith.constant 0 : i32
    %c0_i32_0 = arith.constant 0 : i32
    %c0_i32_1 = arith.constant 0 : i32
    return %c0_i32, %c0_i32_0 : i32, i32
  }
  func.func @transform_2(%arg0: i32) -> (i32, i32) {
    %c0_i32 = arith.constant 0 : i32
    %c0_i32_0 = arith.constant 0 : i32
    %c0_i32_1 = arith.constant 0 : i32
    return %c0_i32, %c0_i32_0 : i32, i32
  }
  func.func @transform_3(%arg0: i32) -> (i32, i32, i32) {
    %c0_i32 = arith.constant 0 : i32
    %c0_i32_0 = arith.constant 0 : i32
    %c0_i32_1 = arith.constant 0 : i32
    %c0_i32_2 = arith.constant 0 : i32
    return %c0_i32, %c0_i32_0, %c0_i32_1 : i32, i32, i32
  }
  func.func @transform_4(%arg0: i32) -> (i32, i32) {
    %c0_i32 = arith.constant 0 : i32
    %c0_i32_0 = arith.constant 0 : i32
    %c0_i32_1 = arith.constant 0 : i32
    return %c0_i32, %c0_i32_0 : i32, i32
  }
  func.func @transform_5(%arg0: i32) -> (i32, i32) {
    %c0_i32 = arith.constant 0 : i32
    %c0_i32_0 = arith.constant 0 : i32
    %c0_i32_1 = arith.constant 0 : i32
    return %c0_i32, %c0_i32_0 : i32, i32
  }
  func.func @transform_6(%arg0: i32) -> (i32, i32) {
    %c0_i32 = arith.constant 0 : i32
    %c0_i32_0 = arith.constant 0 : i32
    %c0_i32_1 = arith.constant 0 : i32
    return %c0_i32, %c0_i32_0 : i32, i32
  }
  func.func @transform_7(%arg0: i32) -> (i32, i32, i32) {
    %c0_i32 = arith.constant 0 : i32
    %c0_i32_0 = arith.constant 0 : i32
    %c0_i32_1 = arith.constant 0 : i32
    return %arg0, %c0_i32, %c0_i32_0 : i32, i32, i32
  }
}

</mosaic_0001>

<bundles_post_ra>
// kernel: tpu_custom_call.1
= control target key start
LH: loop header
LB: loop body
LE: loop exit
PB: predicated region body
PF: predicated region fallthrough
CT: control target
= control target key end

     0   :  { %12 = vsyncpa [#allocation3], 0  ;;  %s1366_s0 = inlined_call_operand.hbm [shape: f32[2,8,128], index: 0, kind: input, shape index: {}]   ;;  %s1367_s1 = inlined_call_operand.hbm [shape: f32[128,128], index: 1, kind: input, shape index: {}]   ;;  %s1368_s2 = inlined_call_operand.vmem [shape: f32[1,128], index: 2, kind: input, shape index: {}]   ;;  %s1369_s3 = inlined_call_operand.hbm [shape: f32[3,128,128], index: 3, kind: input, shape index: {}]   ;;  %s1370_s4 = inlined_call_operand.vmem [shape: f32[1,128], index: 4, kind: input, shape index: {}]   ;;  %s1371_s5 = inlined_call_operand.hbm [shape: f32[128,128], index: 5, kind: input, shape index: {}]   ;;  %s1372_s6 = inlined_call_operand.vmem [shape: f32[1,128], index: 6, kind: input, shape index: {}]   ;;  %s1373_s7 = inlined_call_operand.hbm [shape: f32[2,8,128], index: 7, kind: output, shape index: {}]  }
   0x1   :  { %13 = vsyncpa [#allocation6], 0 }
   0x2   :  { %14 = vsyncpa [#allocation9], 0 }
   0x3   :  { %15 = vsyncpa [#allocation4], 0  ;;  %s1206_s24 = smov [#allocation5]   ;;  %s1207_s26 = smov [#allocation2]  }
   0x4   :  { %s33_s25 = sshll.u32 %s1206_s24, 4  ;;  %s21_s27 = sshll.u32 %s1207_s26, 4  ;;  %s34_s25 = int_to_ptr.vmem [resolvable:$true] %s33_s25  ;;  %s1253_s27 = int_to_ptr.vmem [resolvable:$true] %s21_s27 }
   0x5   :  { %s1088_s30 = scalar_lea.hbm %s1367_s1, 2048 }
   0x6   :  { %p1089_p0 = scmp.ne.s32.totalorder %s1367_s1, %s1088_s30  ;;  %p1092_p1 = scmp.lt.u32.totalorder %s1088_s30, %s1367_s1 }
   0x8   :  { %p1094_p2 = pnand %p1092_p1, %p1089_p0 }
   0xa   :  { %1097 = shalt.err (!%p1094_p2)
}
   0xb   :  { %s1098_s12 = scalar_lea.vmem %s34_s25, 2048  ;;  %p1103_p4 = scmp.lt.s32.totalorder %s34_s25, %s34_s25 }
   0xc   :  { %p1099_p3 = scmp.ne.s32.totalorder %s34_s25, %s1098_s12  ;;  %p1104_p5 = scmp.lt.s32.totalorder %s1098_s12, %s1098_s12 }
   0xe   :  { %p1105_p6 = por %p1104_p5, %p1103_p4 }
  0x10   :  { %p1106_p7 = pnand %p1105_p6, %p1099_p3 }
  0x12   :  { %1109 = shalt.err (!%p1106_p7)
}
  0x13   :  { %s1208_s13 = smov 128   ;;  %s1209_s14 = smov 8  }
  0x14   :  { %39 = dma.hbm_to_vmem [thread:$0]  %s1367_s1, 2048, %s34_s25, [#allocation6], %s1208_s13, %s1208_s13, %s1209_s14  }
  0x15   :  { %s1110_s19 = scalar_lea.hbm %s1366_s0, 256 }
  0x16   :  { %p1111_p8 = scmp.ne.s32.totalorder %s1366_s0, %s1110_s19  ;;  %p1114_p9 = scmp.lt.u32.totalorder %s1110_s19, %s1366_s0 }
  0x18   :  { %p1116_p10 = pnand %p1114_p9, %p1111_p8 }
  0x1a   :  { %1119 = shalt.err (!%p1116_p10)
}
  0x1b   :  { %s1120_s24 = scalar_lea.vmem %s1253_s27, 256  ;;  %p1125_p12 = scmp.lt.s32.totalorder %s1253_s27, %s1253_s27 }
  0x1c   :  { %p1121_p11 = scmp.ne.s32.totalorder %s1253_s27, %s1120_s24  ;;  %p1126_p13 = scmp.lt.s32.totalorder %s1120_s24, %s1120_s24 }
  0x1e   :  { %p1127_p0 = por %p1126_p13, %p1125_p12 }
  0x20   :  { %p1128_p1 = pnand %p1127_p0, %p1121_p11 }
  0x22   :  { %1131 = shalt.err (!%p1128_p1)
}
  0x23   :  { %27 = dma.hbm_to_vmem [thread:$0]  %s1366_s0, 256, %s1253_s27, [#allocation3], %s1208_s13, %s1208_s13, %s1209_s14  }
  0x24   :  { %s1210_s26 = smov [#allocation7]   ;;  %s1211_s29 = smov [#allocation8]  }
  0x25   :  { %s47_s28 = sshll.u32 %s1210_s26, 4  ;;  %s61_s30 = sshll.u32 %s1211_s29, 4  ;;  %s48_s28 = int_to_ptr.vmem [resolvable:$true] %s47_s28  ;;  %s1290_s30 = int_to_ptr.vmem [resolvable:$true] %s61_s30 }
  0x26   :  { %s1132_s10 = scalar_lea.hbm %s1369_s3, 6144 }
  0x27   :  { %p1133_p2 = scmp.ne.s32.totalorder %s1369_s3, %s1132_s10  ;;  %p1136_p3 = scmp.lt.u32.totalorder %s1132_s10, %s1369_s3 }
  0x29   :  { %p1138_p4 = pnand %p1136_p3, %p1133_p2 }
  0x2b   :  { %1141 = shalt.err (!%p1138_p4)
}
  0x2c   :  { %s1142_s0 = scalar_lea.vmem %s48_s28, 6144  ;;  %p1147_p6 = scmp.lt.s32.totalorder %s48_s28, %s48_s28 }
  0x2d   :  { %p1143_p5 = scmp.ne.s32.totalorder %s48_s28, %s1142_s0  ;;  %p1148_p7 = scmp.lt.s32.totalorder %s1142_s0, %s1142_s0 }
  0x2f   :  { %p1149_p8 = por %p1148_p7, %p1147_p6 }
  0x31   :  { %p1150_p9 = pnand %p1149_p8, %p1143_p5 }
  0x33   :  { %1153 = shalt.err (!%p1150_p9)
}
  0x34   :  { %53 = dma.hbm_to_vmem [thread:$0]  %s1369_s3, 6144, %s48_s28, [#allocation6], %s1208_s13, %s1208_s13, %s1209_s14  }
  0x35   :  { %s1154_s20 = scalar_lea.hbm %s1371_s5, 2048 }
  0x36   :  { %p1155_p10 = scmp.ne.s32.totalorder %s1371_s5, %s1154_s20  ;;  %p1158_p11 = scmp.lt.u32.totalorder %s1154_s20, %s1371_s5 }
  0x38   :  { %p1160_p12 = pnand %p1158_p11, %p1155_p10 }
  0x3a   :  { %1163 = shalt.err (!%p1160_p12)
}
  0x3b   :  { %s1164_s1 = scalar_lea.vmem %s1290_s30, 2048  ;;  %p1169_p0 = scmp.lt.s32.totalorder %s1290_s30, %s1290_s30 }
  0x3c   :  { %p1165_p13 = scmp.ne.s32.totalorder %s1290_s30, %s1164_s1  ;;  %p1170_p1 = scmp.lt.s32.totalorder %s1164_s1, %s1164_s1 }
  0x3e   :  { %p1171_p2 = por %p1170_p1, %p1169_p0 }
  0x40   :  { %p1172_p3 = pnand %p1171_p2, %p1165_p13 }
  0x42   :  { %1175 = shalt.err (!%p1172_p3)
}
  0x43   :  { %67 = dma.hbm_to_vmem [thread:$0]  %s1371_s5, 2048, %s1290_s30, [#allocation9], %s1208_s13, %s1208_s13, %s1209_s14  }
  0x44   :  { %1198 = dma.done.wait [#allocation3], 256  }
  0x45   :  { %1199 = vsyncadd [#allocation3], 4294967040 }
  0x46   :  { %1200 = dma.done.wait [#allocation6], 8192  }
  0x47   :  { %1201 = vsyncadd [#allocation6], 4294959104 }
  0x48   :  { %1202 = dma.done.wait [#allocation9], 2048  }
  0x49   :  { %1203 = vsyncadd [#allocation9], 4294965248  ;;  %v84_v0 = vld [vmem:[#allocation5] sm:$0xff]  ;;  %v85_v1 = vld [vmem:[#allocation5 + $0x8] sm:$0xff]  ;;  %vm191_vm0 = vcmask 1040384   ;;  %vm200_vm1 = vcmask 1046528  }
  0x4a   :  { %v86_v2 = vld [vmem:[#allocation5 + $0x10] sm:$0xff]  ;;  %v909_v3 = vpack.c.bf16 %v85_v1, %v84_v0  ;;  %v87_v4 = vld [vmem:[#allocation5 + $0x18] sm:$0xff]  ;;  %v88_v6 = vld [vmem:[#allocation5 + $0x20] sm:$0xff] }
  0x4b   :  { %v913_v5 = vpack.c.bf16 %v87_v4, %v86_v2  ;;  %v89_v7 = vld [vmem:[#allocation5 + $0x28] sm:$0xff]  ;;  %v90_v9 = vld [vmem:[#allocation5 + $0x30] sm:$0xff]  ;;  %v91_v10 = vld [vmem:[#allocation5 + $0x38] sm:$0xff] }
  0x4c   :  { %910 = vmatprep.subr.bf16.mxu0 %v909_v3  ;;  %v917_v8 = vpack.c.bf16 %v89_v7, %v88_v6  ;;  %v82_v11 = vld [vmem:[#allocation2] sm:$0xff]  ;;  %v227_v12 = vld [vmem:[#allocation7 + $0x80] sm:$0xff]  ;;  %v228_v13 = vld [vmem:[#allocation7 + $0x88] sm:$0xff]  ;;  %v921_v20 = vpack.c.bf16 %v91_v10, %v90_v9 }
  0x4d   :  { %912 = vmatpush3.bf16.msra.mxu0 %v909_v3  ;;  %766 = vmatprep.mubr.f32.mxu0 %v82_v11  ;;  %v229_v14 = vld [vmem:[#allocation7 + $0x90] sm:$0xff]  ;;  %v941_v15 = vpack.c.bf16 %v228_v13, %v227_v12  ;;  %v230_v16 = vld [vmem:[#allocation7 + $0x98] sm:$0xff]  ;;  %v231_v18 = vld [vmem:[#allocation7 + $0xa0] sm:$0xff]  ;;  %v184_v11 = vlaneseq }
  0x4e   :  { %914 = vmatprep.subr.bf16.mxu0 %v913_v5  ;;  %v945_v17 = vpack.c.bf16 %v230_v16, %v229_v14  ;;  %v232_v19 = vld [vmem:[#allocation7 + $0xa8] sm:$0xff]  ;;  %v92_v21 = vld [vmem:[#allocation5 + $0x40] sm:$0xff]  ;;  %v233_v24 = vld [vmem:[#allocation7 + $0xb0] sm:$0xff] }
  0x4f   :  { %942 = vmatprep.subr.bf16.mxu1 %v941_v15  ;;  %v93_v22 = vld [vmem:[#allocation5 + $0x48] sm:$0xff]  ;;  %v949_v23 = vpack.c.bf16 %v232_v19, %v231_v18  ;;  %v234_v25 = vld [vmem:[#allocation7 + $0xb8] sm:$0xff]  ;;  %v94_v27 = vld [vmem:[#allocation5 + $0x50] sm:$0xff]  ;;  %v1330_v16 = vshrl.u32 %v184_v11, 7 }
  0x50   :  { %944 = vmatpush3.bf16.msra.mxu1 %v941_v15  ;;  %v925_v26 = vpack.c.bf16 %v93_v22, %v92_v21  ;;  %v95_v28 = vld [vmem:[#allocation5 + $0x58] sm:$0xff]  ;;  %v953_v29 = vpack.c.bf16 %v234_v25, %v233_v24  ;;  %v235_v30 = vld [vmem:[#allocation7 + $0xc0] sm:$0xff]  ;;  %v236_v31 = vld [vmem:[#allocation7 + $0xc8] sm:$0xff] }
  0x51   :  { %916 = vmatpush3.bf16.msra.mxu0 %v913_v5  ;;  %946 = vmatprep.subr.bf16.mxu1 %v945_v17  ;;  %v929_v32 = vpack.c.bf16 %v95_v28, %v94_v27  ;;  %v96_v33 = vld [vmem:[#allocation5 + $0x60] sm:$0xff]  ;;  %v97_v34 = vld [vmem:[#allocation5 + $0x68] sm:$0xff]  ;;  %v957_v35 = vpack.c.bf16 %v236_v31, %v235_v30  ;;  %v237_v36 = vld [vmem:[#allocation7 + $0xd0] sm:$0xff]  ;;  %vm642_vm2 = vcmp.ne.s32.totalorder %v1330_v16, 0  ;;  %vm643_vm3 = vcmp.ne.s32.totalorder %v1330_v16, 7 }
  0x52   :  { %918 = vmatprep.subr.bf16.mxu0 %v917_v8  ;;  %v238_v37 = vld [vmem:[#allocation7 + $0xd8] sm:$0xff]  ;;  %v933_v38 = vpack.c.bf16 %v97_v34, %v96_v33  ;;  %v98_v39 = vld [vmem:[#allocation5 + $0x70] sm:$0xff]  ;;  %v239_v42 = vld [vmem:[#allocation7 + $0xe0] sm:$0xff] }
  0x53   :  { %v99_v40 = vld [vmem:[#allocation5 + $0x78] sm:$0xff]  ;;  %v961_v41 = vpack.c.bf16 %v238_v37, %v237_v36  ;;  %v240_v43 = vld [vmem:[#allocation7 + $0xe8] sm:$0xff]  ;;  %v241_v47 = vld [vmem:[#allocation7 + $0xf0] sm:$0xff] }
  0x54   :  { %948 = vmatpush3.bf16.msra.mxu1 %v945_v17  ;;  %v937_v44 = vpack.c.bf16 %v99_v40, %v98_v39  ;;  %v965_v45 = vpack.c.bf16 %v240_v43, %v239_v42  ;;  %v83_v46 = vld [vmem:[#allocation2 + $0x8] sm:$0xff]  ;;  %v210_v50 = vld [vmem:[#allocation7] sm:$0xff]  ;;  %v211_v51 = vld [vmem:[#allocation7 + $0x8] sm:$0xff] }
  0x55   :  { %920 = vmatpush3.bf16.msra.mxu0 %v917_v8  ;;  %950 = vmatprep.subr.bf16.mxu1 %v949_v23  ;;  %v242_v48 = vld [vmem:[#allocation7 + $0xf8] sm:$0xff]  ;;  %v973_v52 = vpack.c.bf16 %v211_v51, %v210_v50  ;;  %v498_v53 = vld [vmem:[#allocation8] sm:$0xff]  ;;  %v499_v54 = vld [vmem:[#allocation8 + $0x8] sm:$0xff] }
  0x56   :  { %922 = vmatprep.subr.bf16.mxu0 %v921_v20  ;;  %v969_v49 = vpack.c.bf16 %v242_v48, %v241_v47  ;;  %v500_v55 = vld [vmem:[#allocation8 + $0x10] sm:$0xff]  ;;  %v1037_v56 = vpack.c.bf16 %v499_v54, %v498_v53  ;;  %v501_v57 = vld [vmem:[#allocation8 + $0x18] sm:$0xff]  ;;  %v502_v59 = vld [vmem:[#allocation8 + $0x20] sm:$0xff] }
  0x57   :  { %v1041_v58 = vpack.c.bf16 %v501_v57, %v500_v55  ;;  %v503_v60 = vld [vmem:[#allocation8 + $0x28] sm:$0xff]  ;;  %v504_v62 = vld [vmem:[#allocation8 + $0x30] sm:$0xff]  ;;  %v505_v63 = vld [vmem:[#allocation8 + $0x38] sm:$0xff] }
  0x58   :  { %952 = vmatpush3.bf16.msra.mxu1 %v949_v23  ;;  %v1045_v61 = vpack.c.bf16 %v503_v60, %v502_v59  ;;  %v1049_v0 = vpack.c.bf16 %v505_v63, %v504_v62  ;;  %v506_v1 = vld [vmem:[#allocation8 + $0x40] sm:$0xff]  ;;  %v507_v2 = vld [vmem:[#allocation8 + $0x48] sm:$0xff]  ;;  %v508_v4 = vld [vmem:[#allocation8 + $0x50] sm:$0xff] }
  0x59   :  { %924 = vmatpush3.bf16.msra.mxu0 %v921_v20  ;;  %954 = vmatprep.subr.bf16.mxu1 %v953_v29  ;;  %v1053_v3 = vpack.c.bf16 %v507_v2, %v506_v1  ;;  %v509_v5 = vld [vmem:[#allocation8 + $0x58] sm:$0xff]  ;;  %v510_v7 = vld [vmem:[#allocation8 + $0x60] sm:$0xff]  ;;  %v511_v8 = vld [vmem:[#allocation8 + $0x68] sm:$0xff] }
  0x5a   :  { %926 = vmatprep.subr.bf16.mxu0 %v925_v26  ;;  %v1057_v6 = vpack.c.bf16 %v509_v5, %v508_v4  ;;  %v1061_v9 = vpack.c.bf16 %v511_v8, %v510_v7  ;;  %v629_v10 = vld [vmem:[%s1368_s2] ss:$0 sm:$0xff]  ;;  %v213_v18 = vld [vmem:[#allocation7 + $0x18] sm:$0xff]  ;;  %v215_v27 = vld [vmem:[#allocation7 + $0x28] sm:$0xff] }
  0x5b   :  { %v212_v17 = vld [vmem:[#allocation7 + $0x10] sm:$0xff]  ;;  %v217_v34 = vld [vmem:[#allocation7 + $0x38] sm:$0xff]  ;;  %v218_v36 = vld [vmem:[#allocation7 + $0x40] sm:$0xff] }
  0x5c   :  { %956 = vmatpush3.bf16.msra.mxu1 %v953_v29  ;;  %v977_v23 = vpack.c.bf16 %v213_v18, %v212_v17  ;;  %v216_v33 = vld [vmem:[#allocation7 + $0x30] sm:$0xff]  ;;  %v219_v37 = vld [vmem:[#allocation7 + $0x48] sm:$0xff]  ;;  %v221_v40 = vld [vmem:[#allocation7 + $0x58] sm:$0xff] }
  0x5d   :  { %928 = vmatpush3.bf16.msra.mxu0 %v925_v26  ;;  %958 = vmatprep.subr.bf16.mxu1 %v957_v35  ;;  %v214_v26 = vld [vmem:[#allocation7 + $0x20] sm:$0xff]  ;;  %v220_v39 = vld [vmem:[#allocation7 + $0x50] sm:$0xff]  ;;  %v223_v43 = vld [vmem:[#allocation7 + $0x68] sm:$0xff] }
  0x5e   :  { %930 = vmatprep.subr.bf16.mxu0 %v929_v32  ;;  %v222_v42 = vld [vmem:[#allocation7 + $0x60] sm:$0xff]  ;;  %v396_v51 = vld [vmem:[#allocation7 + $0x110] sm:$0xff]  ;;  %v399_v55 = vld [vmem:[#allocation7 + $0x128] sm:$0xff] }
  0x5f   :  { %v394_v48 = vld [vmem:[#allocation7 + $0x100] sm:$0xff]  ;;  %v400_v57 = vld [vmem:[#allocation7 + $0x130] sm:$0xff] }
  0x60   :  { %960 = vmatpush3.bf16.msra.mxu1 %v957_v35  ;;  %v985_v35 = vpack.c.bf16 %v217_v34, %v216_v33  ;;  %v398_v54 = vld [vmem:[#allocation7 + $0x120] sm:$0xff]  ;;  %v404_v63 = vld [vmem:[#allocation7 + $0x150] sm:$0xff] }
  0x61   :  { %932 = vmatpush3.bf16.msra.mxu0 %v929_v32  ;;  %962 = vmatprep.subr.bf16.mxu1 %v961_v41  ;;  %v981_v32 = vpack.c.bf16 %v215_v27, %v214_v26  ;;  %v402_v60 = vld [vmem:[#allocation7 + $0x140] sm:$0xff]  ;;  %v408_v5 = vld [vmem:[#allocation7 + $0x170] sm:$0xff] }
  0x62   :  { %934 = vmatprep.subr.bf16.mxu0 %v933_v38  ;;  %v406_v2 = vld [vmem:[#allocation7 + $0x160] sm:$0xff]  ;;  %v512_v8 = vld [vmem:[#allocation8 + $0x70] sm:$0xff] }
  0x63   :  { %v638_v11 = vld [vmem:[%s1370_s4] ss:$0 sm:$0xff]  ;;  %s1212_s4 = smov [#allocation10]  }
  0x64   :  { %964 = vmatpush3.bf16.msra.mxu1 %v961_v41  ;;  %v993_v41 = vpack.c.bf16 %v221_v40, %v220_v39  ;;  %v639_v16 = vld [vmem:[%s1372_s6] ss:$0 sm:$0xff]  ;;  %s615_s8 = sshll.u32 %s1212_s4, 4  ;;  %s616_s8 = int_to_ptr.vmem [resolvable:$true] %s615_s8 }
  0x65   :  { %936 = vmatpush3.bf16.msra.mxu0 %v933_v38  ;;  %966 = vmatprep.subr.bf16.mxu1 %v965_v45  ;;  %v989_v38 = vpack.c.bf16 %v219_v37, %v218_v36  ;;  %s1176_s6 = scalar_lea.vmem %s616_s8, 256  ;;  %p1181_p5 = scmp.lt.s32.totalorder %s616_s8, %s616_s8 }
  0x66   :  { %938 = vmatprep.subr.bf16.mxu0 %v937_v44  ;;  %p1177_p4 = scmp.ne.s32.totalorder %s616_s8, %s1176_s6  ;;  %p1182_p6 = scmp.lt.s32.totalorder %s1176_s6, %s1176_s6 }
  0x68   :  { %968 = vmatpush3.bf16.msra.mxu1 %v965_v45  ;;  %v224_v45 = vld [vmem:[#allocation7 + $0x70] sm:$0xff]  ;;  %p1183_p7 = por %p1182_p6, %p1181_p5 }
  0x69   :  { %940 = vmatpush3.bf16.msra.mxu0 %v937_v44  ;;  %970 = vmatprep.subr.bf16.mxu1 %v969_v49  ;;  %v997_v44 = vpack.c.bf16 %v223_v43, %v222_v42 }
  0x6a   :  { %1038 = vmatprep.subr.bf16.mxu0 %v1037_v56  ;;  %p1184_p8 = pnand %p1183_p7, %p1177_p4 }
  0x6c   :  { %767 = vmatmul.mubr.f32.vlgmr.msra.gmra.mrb[0].mxu0 %v83_v46  ;;  %972 = vmatpush3.bf16.msra.mxu1 %v969_v49  ;;  %v225_v46 = vld [vmem:[#allocation7 + $0x78] sm:$0xff]  ;;  %v395_v49 = vld [vmem:[#allocation7 + $0x108] sm:$0xff] }
  0x6d   :  { %974 = vmatprep.subr.bf16.mxu1 %v973_v52  ;;  %1040 = vmatpush3.bf16.msra.mxu0 %v1037_v56  ;;  %v1001_v47 = vpack.c.bf16 %v225_v46, %v224_v45  ;;  %v1005_v50 = vpack.c.bf16 %v395_v49, %v394_v48  ;;  %v1013_v56 = vpack.c.bf16 %v399_v55, %v398_v54 }
  0x6e   :  { %1042 = vmatprep.subr.bf16.mxu0 %v1041_v58 }
  0x71   :  { %1044 = vmatpush3.bf16.msra.mxu0 %v1041_v58  ;;  %v401_v58 = vld [vmem:[#allocation7 + $0x138] sm:$0xff] }
  0x72   :  { %1046 = vmatprep.subr.bf16.mxu0 %v1045_v61  ;;  %v1017_v59 = vpack.c.bf16 %v401_v58, %v400_v57 }
  0x75   :  { %1048 = vmatpush3.bf16.msra.mxu0 %v1045_v61  ;;  %v403_v61 = vld [vmem:[#allocation7 + $0x148] sm:$0xff] }
  0x76   :  { %1050 = vmatprep.subr.bf16.mxu0 %v1049_v0  ;;  %v1021_v62 = vpack.c.bf16 %v403_v61, %v402_v60 }
  0x79   :  { %1052 = vmatpush3.bf16.msra.mxu0 %v1049_v0  ;;  %v405_v0 = vld [vmem:[#allocation7 + $0x158] sm:$0xff] }
  0x7a   :  { %1054 = vmatprep.subr.bf16.mxu0 %v1053_v3  ;;  %v1025_v1 = vpack.c.bf16 %v405_v0, %v404_v63 }
  0x7d   :  { %1056 = vmatpush3.bf16.msra.mxu0 %v1053_v3  ;;  %v407_v3 = vld [vmem:[#allocation7 + $0x168] sm:$0xff] }
  0x7e   :  { %1058 = vmatprep.subr.bf16.mxu0 %v1057_v6  ;;  %v1029_v4 = vpack.c.bf16 %v407_v3, %v406_v2 }
  0x81   :  { %1060 = vmatpush3.bf16.msra.mxu0 %v1057_v6  ;;  %v409_v6 = vld [vmem:[#allocation7 + $0x178] sm:$0xff] }
  0x82   :  { %1062 = vmatprep.subr.bf16.mxu0 %v1061_v9  ;;  %v1033_v7 = vpack.c.bf16 %v409_v6, %v408_v5 }
  0x85   :  { %1064 = vmatpush3.bf16.msra.mxu0 %v1061_v9  ;;  %v513_v9 = vld [vmem:[#allocation8 + $0x78] sm:$0xff] }
 0x13f   :  { %v768_v12 = vpop.f32.mrb[0].mxu0 }
 0x140   :  { %v179_v13 = vadd.f32 %v768_v12, %v629_v10  ;;  %v173_v14 = vpop.f32.mrb[1].mxu0 }
 0x141   :  { %v174_v15 = vadd.f32 %v629_v10, %v173_v14  ;;  %v1065_v10 = vpack.c.bf16 %v513_v9, %v512_v8 }
 0x142   :  { %v183_v19 = vmax.f32 %v179_v13, 0.0 }
 0x143   :  { %v182_v20 = vmax.f32 %v174_v15, 0.0  ;;  %1066 = vmatprep.subr.bf16.mxu0 %v1065_v10 }
 0x144   :  { %v188_v21 = vrot.slane %v183_v19, 7  ;;  %v202_v22 = vrot.slane %v183_v19, 1  ;;  %1068 = vmatpush3.bf16.msra.mxu0 %v1065_v10 }
 0x145   :  { %v192_v24 = vrot.slane %v182_v20, 7  ;;  %v201_v25 = vrot.slane %v182_v20, 1  ;;  %801 = vmatprep.mubr.f32.mxu1 %v182_v20 }
 0x146   :  { %802 = vmatmul.mubr.f32.vlgmr.msra.gmra.mrb[0].mxu1 %v183_v19 }
 0x147   :  { %976 = vmatpush3.bf16.msra.mxu1 %v973_v52  ;;  %v196_v28 = vsel %vm191_vm0, %v188_v21, %v192_v24  ;;  %v193_v29 = vsel %vm191_vm0, %v192_v24, %v188_v21  ;;  %v203_v30 = vsel %vm200_vm1, %v201_v25, %v202_v22  ;;  %v1333_v31 = vsel %vm200_vm1, %v202_v22, %v201_v25  ;;  %v397_v52 = vld [vmem:[#allocation7 + $0x118] sm:$0xff] }
 0x148   :  { %836 = vmatprep.mubr.msk.f32.mxu1 %vm642_vm2, %v196_v28  ;;  %978 = vmatprep.subr.bf16.mxu1 %v977_v23  ;;  %v1009_v53 = vpack.c.bf16 %v397_v52, %v396_v51 }
 0x14b   :  { %980 = vmatpush3.bf16.msra.mxu1 %v977_v23 }
 0x14c   :  { %982 = vmatprep.subr.bf16.mxu1 %v981_v32 }
 0x14f   :  { %984 = vmatpush3.bf16.msra.mxu1 %v981_v32 }
 0x150   :  { %986 = vmatprep.subr.bf16.mxu1 %v985_v35 }
 0x153   :  { %988 = vmatpush3.bf16.msra.mxu1 %v985_v35 }
 0x154   :  { %990 = vmatprep.subr.bf16.mxu1 %v989_v38 }
 0x157   :  { %992 = vmatpush3.bf16.msra.mxu1 %v989_v38 }
 0x158   :  { %994 = vmatprep.subr.bf16.mxu1 %v993_v41 }
 0x15b   :  { %996 = vmatpush3.bf16.msra.mxu1 %v993_v41 }
 0x15c   :  { %998 = vmatprep.subr.bf16.mxu1 %v997_v44 }
 0x15f   :  { %1000 = vmatpush3.bf16.msra.mxu1 %v997_v44 }
 0x160   :  { %1002 = vmatprep.subr.bf16.mxu1 %v1001_v47 }
 0x163   :  { %1004 = vmatpush3.bf16.msra.mxu1 %v1001_v47 }
 0x164   :  { %1006 = vmatprep.subr.bf16.mxu1 %v1005_v50 }
 0x166   :  { %837 = vmatmul.mubr.msk.f32.vlgmr.msra.gmra.mrb[0].mxu1 %vm642_vm2, %v193_v29 }
 0x167   :  { %1008 = vmatpush3.bf16.msra.mxu1 %v1005_v50  ;;  %871 = vmatprep.mubr.msk.f32.mxu1 %vm643_vm3, %v203_v30 }
 0x168   :  { %1010 = vmatprep.subr.bf16.mxu1 %v1009_v53 }
 0x16b   :  { %1012 = vmatpush3.bf16.msra.mxu1 %v1009_v53 }
 0x16c   :  { %1014 = vmatprep.subr.bf16.mxu1 %v1013_v56 }
 0x16f   :  { %1016 = vmatpush3.bf16.msra.mxu1 %v1013_v56 }
 0x170   :  { %1018 = vmatprep.subr.bf16.mxu1 %v1017_v59 }
 0x173   :  { %1020 = vmatpush3.bf16.msra.mxu1 %v1017_v59 }
 0x174   :  { %1022 = vmatprep.subr.bf16.mxu1 %v1021_v62 }
 0x177   :  { %1024 = vmatpush3.bf16.msra.mxu1 %v1021_v62 }
 0x178   :  { %1026 = vmatprep.subr.bf16.mxu1 %v1025_v1 }
 0x17b   :  { %1028 = vmatpush3.bf16.msra.mxu1 %v1025_v1 }
 0x17c   :  { %1030 = vmatprep.subr.bf16.mxu1 %v1029_v4 }
 0x17f   :  { %1032 = vmatpush3.bf16.msra.mxu1 %v1029_v4 }
 0x180   :  { %1034 = vmatprep.subr.bf16.mxu1 %v1033_v7 }
 0x183   :  { %1036 = vmatpush3.bf16.msra.mxu1 %v1033_v7 }
 0x186   :  { %872 = vmatmul.mubr.msk.f32.vlgmr.msra.gmra.mrb[0].mxu1 %vm643_vm3, %v1333_v31 }
 0x259   :  { %v873_v12 = vpop.f32.mrb[0].mxu1 }
 0x25a   :  { %v495_v13 = vadd.f32 %v873_v12, %v638_v11  ;;  %v476_v14 = vpop.f32.mrb[1].mxu1 }
 0x25b   :  { %v494_v15 = vadd.f32 %v638_v11, %v476_v14 }
 0x25c   :  { %v497_v18 = vmax.f32 %v495_v13, 0.0 }
 0x25d   :  { %v496_v17 = vmax.f32 %v494_v15, 0.0 }
 0x25f   :  { %906 = vmatprep.mubr.f32.mxu0 %v496_v17 }
 0x260   :  { %907 = vmatmul.mubr.f32.vlgmr.msra.gmra.mrb[2].mxu0 %v497_v18 }
 0x333   :  { %v908_v19 = vpop.f32.mrb[2].mxu0 }
 0x334   :  { %v593_v20 = vadd.f32 %v908_v19, %v639_v16  ;;  %v587_v21 = vpop.f32.mrb[3].mxu0 }
 0x335   :  { %v588_v22 = vadd.f32 %v639_v16, %v587_v21 }
 0x336   :  { %v641_v23 = vmul.f32 -1.442695, %v593_v20 }
 0x337   :  { %v640_v24 = vmul.f32 -1.442695, %v588_v22 }
 0x338   :  { %1080 = vpow2.f32 %v641_v23 }
 0x339   :  { %1082 = vpow2.f32 %v640_v24 }
 0x342   :  { %v1081_v25 = vpop.eup %1080 }
 0x343   :  { %v1083_v26 = vpop.eup %1082  ;;  %v603_v27 = vadd.f32 1.0, %v1081_v25 }
 0x344   :  { %v602_v28 = vadd.f32 1.0, %v1083_v26 }
 0x345   :  { %1084 = vrcp.f32 %v603_v27 }
 0x346   :  { %1086 = vrcp.f32 %v602_v28 }
 0x34f   :  { %v1085_v29 = vpop.eup %1084 }
 0x350   :  { %v1087_v30 = vpop.eup %1086  ;;  %609 = vst [vmem:[#allocation10 + $0x8] sm:$0xff] %v1085_v29 }
 0x351   :  { %608 = vst [vmem:[#allocation10] sm:$0xff] %v1087_v30 }
 0x352   :  { %1187 = shalt.err (!%p1184_p8)
}
 0x353   :  { %s1188_s11 = scalar_lea.hbm %s1373_s7, 256 }
 0x354   :  { %p1189_p9 = scmp.ne.s32.totalorder %s1373_s7, %s1188_s11  ;;  %p1192_p10 = scmp.lt.u32.totalorder %s1188_s11, %s1373_s7 }
 0x356   :  { %p1194_p11 = pnand %p1192_p10, %p1189_p9 }
 0x358   :  { %1197 = shalt.err (!%p1194_p11)
}
 0x359   :  { %621 = dma.vmem_to_hbm [thread:$0]  %s616_s8, 256, %s1373_s7, [#allocation4], %s1208_s13, %s1208_s13, %s1209_s14  }
 0x35a   :  { %1204 = dma.done.wait [#allocation4], 256  }
 0x35b   :  { %1205 = vsyncadd [#allocation4], 4294967040 }
 0x35c   :  { %625 = vsyncpa [#allocation3], 1 }
 0x35d   :  { %626 = vsyncpa [#allocation6], 1 }
 0x35e   :  { %627 = vsyncpa [#allocation9], 1 }
 0x35f   :  { %628 = vsyncpa [#allocation4], 1 }

</bundles_post_ra>
